<compile_context>
chip_gen: v6e
topology: v6e:2x2x1
jax: 0.10.0
libtpu: 0.0.40
codegen_flags: <defaults>
</compile_context>

<pallas_src>
import jax
import jax.numpy as jnp
from jax.experimental import pallas as pl
from jax.experimental.pallas import tpu as pltpu

_VMEM_BUDGET = 24 * 1024 * 1024   # conservative per-core budget (v5e/v6e/v7x)
_VMEM_LIMIT = 32 * 1024 * 1024    # explicit scoped-VMEM limit passed to Mosaic
_GAUSS_MIN_M = 1024               # compute-bound crossover (padded M rows)


def _cl4_kernel(xr_ref, xi_ref, wr_ref, wi_ref, bd_ref, bs_ref,
                or_ref, oi_ref):
    """4-matmul / 2-weight-stream form (memory-bound, small/medium M)."""
    k = pl.program_id(2)

    @pl.when(k == 0)
    def _init():
        or_ref[...] = jnp.broadcast_to(bd_ref[...], or_ref.shape)  # br - bi
        oi_ref[...] = jnp.broadcast_to(bs_ref[...], oi_ref.shape)  # br + bi

    xr = xr_ref[...]
    xi = xi_ref[...]
    wr = wr_ref[...]
    wi = wi_ref[...]
    rr = jnp.dot(xr, wr, preferred_element_type=jnp.float32)
    ii = jnp.dot(xi, wi, preferred_element_type=jnp.float32)
    ri = jnp.dot(xr, wi, preferred_element_type=jnp.float32)
    ir = jnp.dot(xi, wr, preferred_element_type=jnp.float32)
    or_ref[...] += rr - ii
    oi_ref[...] += ri + ir


def _cl3_kernel(xr_ref, xi_ref, wr_ref, wi_ref, ws_ref, bd_ref, bs_ref,
                or_ref, oi_ref):
    """Gauss 3-matmul form (compute-bound, large M)."""
    k = pl.program_id(2)

    @pl.when(k == 0)
    def _init():
        or_ref[...] = jnp.broadcast_to(bd_ref[...], or_ref.shape)
        oi_ref[...] = jnp.broadcast_to(bs_ref[...], oi_ref.shape)

    xr = xr_ref[...]
    xi = xi_ref[...]
    t1 = jnp.dot(xr, wr_ref[...], preferred_element_type=jnp.float32)
    t2 = jnp.dot(xi, wi_ref[...], preferred_element_type=jnp.float32)
    t3 = jnp.dot(xr + xi, ws_ref[...], preferred_element_type=jnp.float32)
    or_ref[...] += t1 - t2          # xr@Wr - xi@Wi   (partial over K)
    oi_ref[...] += t3 - t1 - t2     # xr@Wi + xi@Wr   (partial over K)


def _round_up(x, m):
    return (x + m - 1) // m * m


def _footprint_bytes(tm, tn, tk, n_weight_streams):
    """Rough per-step VMEM footprint with default double-buffering."""
    x_b = 2 * 2 * tm * tk * 2                   # xr, xi   (bf16)
    w_b = n_weight_streams * 2 * tk * tn * 2    # weights  (bf16)
    b_b = 2 * 2 * tn * 4                        # bias rows (f32)
    o_b = 2 * 2 * tm * tn * 4                   # outputs  (f32)
    return x_b + w_b + b_b + o_b


def _choose_tiles(M, N, K, use_gauss):
    n_w = 3 if use_gauss else 2
    m_al = _round_up(max(M, 1), 8)
    n_pad = _round_up(N, 128)
    k_pad = _round_up(K, 128)

    # M (sublane) tile.
    for cand in (512, 256, 128):
        if m_al % cand == 0:
            tm = cand
            break
    else:
        tm = m_al if m_al <= 512 else 256
    m_pad = _round_up(m_al, tm)

    # Weight-resident fast path: collapse the j/k grid axes so Wr/Wi(/Ws) are
    # DMA'd from HBM exactly once instead of once per M block.
    if _footprint_bytes(tm, n_pad, k_pad, n_w) <= _VMEM_BUDGET:
        tn, tk = n_pad, k_pad
    else:
        tn_cands = [c for c in (512, 384, 256, 128) if n_pad % c == 0] or [128]
        tk_cands = [c for c in (512, 256, 128) if k_pad % c == 0] or [128]
        tn, tk = tn_cands[-1], tk_cands[-1]
        found = False
        for tn_c in tn_cands:
            for tk_c in tk_cands:
                if _footprint_bytes(tm, tn_c, tk_c, n_w) <= _VMEM_BUDGET:
                    tn, tk = tn_c, tk_c
                    found = True
                    break
            if found:
                break
        while tm > 128 and _footprint_bytes(tm, tn, tk, n_w) > _VMEM_BUDGET:
            tm = max(128, tm // 2)
        m_pad = _round_up(m_al, tm)

    # Megacore (v7x has 2 TensorCores): make sure at least one "parallel" grid
    # axis has >= 2 blocks so the second core is not idle.
    if m_pad == tm and n_pad == tn:
        if n_pad >= 256 and (n_pad // 2) % 128 == 0:
            tn = n_pad // 2
        elif m_pad >= 16 and (m_pad // 2) % 8 == 0:
            tm = m_pad // 2

    return tm, tn, tk, m_pad, n_pad, k_pad


def _maybe_pad2d(a, rows, cols):
    pr = rows - a.shape[0]
    pc = cols - a.shape[1]
    if pr == 0 and pc == 0:
        return a
    return jnp.pad(a, ((0, pr), (0, pc)))


def complex_linear(x_real, x_imag, w_real, w_imag, b_real, b_imag):
    """x_real/x_imag: [..., in_features].
    w_real/w_imag: [out_features, in_features] (PyTorch nn.Linear layout).
    b_real/b_imag: [out_features].
    Returns complex64 array of shape [..., out_features]."""
    out_features, in_features = w_real.shape
    batch_shape = x_real.shape[:-1]
    M = 1
    for d in batch_shape:
        M *= d
    K, N = in_features, out_features

    use_gauss = _round_up(max(M, 1), 8) >= _GAUSS_MIN_M
    tm, tn, tk, m_pad, n_pad, k_pad = _choose_tiles(M, N, K, use_gauss)

    f32 = jnp.float32
    bf16 = jnp.bfloat16

    # Activations: bf16, padded only when the shape actually needs it.
    xr = _maybe_pad2d(x_real.reshape(M, K).astype(bf16), m_pad, k_pad)
    xi = _maybe_pad2d(x_imag.reshape(M, K).astype(bf16), m_pad, k_pad)

    # Weights: transposed to (K, N), bf16.
    wr = _maybe_pad2d(w_real.astype(f32).T.astype(bf16), k_pad, n_pad)
    wi = _maybe_pad2d(w_imag.astype(f32).T.astype(bf16), k_pad, n_pad)

    # Bias folded: out_real += (br - bi), out_imag += (br + bi); kept f32.
    br = b_real.astype(f32)
    bi = b_imag.astype(f32)
    bd = _maybe_pad2d((br - bi).reshape(1, N), 1, n_pad)
    bs = _maybe_pad2d((br + bi).reshape(1, N), 1, n_pad)

    grid = (m_pad // tm, n_pad // tn, k_pad // tk)

    x_spec = pl.BlockSpec((tm, tk), lambda i, j, k: (i, k))
    w_spec = pl.BlockSpec((tk, tn), lambda i, j, k: (k, j))
    b_spec = pl.BlockSpec((1, tn), lambda i, j, k: (0, j))
    o_spec = pl.BlockSpec((tm, tn), lambda i, j, k: (i, j))

    if use_gauss:
        kernel = _cl3_kernel
        ws = _maybe_pad2d(
            (w_real.astype(f32) + w_imag.astype(f32)).T.astype(bf16),
            k_pad, n_pad)
        ins = (xr, xi, wr, wi, ws, bd, bs)
        in_specs = [x_spec, x_spec, w_spec, w_spec, w_spec, b_spec, b_spec]
        n_mm, n_w = 3, 3
    else:
        kernel = _cl4_kernel
        ins = (xr, xi, wr, wi, bd, bs)
        in_specs = [x_spec, x_spec, w_spec, w_spec, b_spec, b_spec]
        n_mm, n_w = 4, 2

    flops = 2 * n_mm * m_pad * n_pad * k_pad
    bytes_accessed = (2 * m_pad * k_pad * 2          # xr, xi (bf16)
                      + n_w * k_pad * n_pad * 2      # weights (bf16)
                      + 2 * n_pad * 4                # bias rows (f32)
                      + 2 * m_pad * n_pad * 4)       # outputs (f32)

    out_r, out_i = pl.pallas_call(
        kernel,
        out_shape=(jax.ShapeDtypeStruct((m_pad, n_pad), f32),
                   jax.ShapeDtypeStruct((m_pad, n_pad), f32)),
        grid_spec=pltpu.PrefetchScalarGridSpec(
            num_scalar_prefetch=0,
            grid=grid,
            in_specs=in_specs,
            out_specs=[o_spec, o_spec]),
        compiler_params=pltpu.CompilerParams(
            dimension_semantics=("parallel", "parallel", "arbitrary"),
            vmem_limit_bytes=_VMEM_LIMIT),
        cost_estimate=pl.CostEstimate(flops=flops, transcendentals=0,
                                      bytes_accessed=bytes_accessed),
    )(*ins)

    out = jax.lax.complex(out_r[:M, :N], out_i[:M, :N])
    return out.reshape(*batch_shape, N)


def _reference(x_real, x_imag, w_real, w_imag, b_real, b_imag, quantize):
    """PyTorch forward semantics; optionally bf16-quantize matmul operands to
    mirror what the kernel feeds the MXU (accumulation stays f32)."""
    f32 = jnp.float32
    if quantize:
        q = lambda a: a.astype(jnp.bfloat16).astype(f32)
    else:
        q = lambda a: a.astype(f32)
    xr, xi, wr, wi = q(x_real), q(x_imag), q(w_real), q(w_imag)
    real = (xr @ wr.T + b_real) - (xi @ wi.T + b_imag)
    imag = (xr @ wi.T + b_imag) + (xi @ wr.T + b_real)
    return jax.lax.complex(real, imag)


if __name__ == "__main__":
    key = jax.random.PRNGKey(0)
    ks = jax.random.split(key, 12)

    # --- Test 1: small shape -> memory-bound 4-matmul path. ---------------
    batch, seq, in_f, out_f = 2, 8, 32, 16
    scale = 1.0 / (in_f ** 0.5)
    x_real = jax.random.normal(ks[0], (batch, seq, in_f), jnp.float32)
    x_imag = jax.random.normal(ks[1], (batch, seq, in_f), jnp.float32)
    # zero_init=True in the module would zero the weights; random weights are
    # used so the matmuls are exercised.  Biases follow nn.Linear defaults.
    w_real = jax.random.uniform(ks[2], (out_f, in_f), jnp.float32, -scale, scale)
    w_imag = jax.random.uniform(ks[3], (out_f, in_f), jnp.float32, -scale, scale)
    b_real = jax.random.uniform(ks[4], (out_f,), jnp.float32, -scale, scale)
    b_imag = jax.random.uniform(ks[5], (out_f,), jnp.float32, -scale, scale)

    out = jax.block_until_ready(
        complex_linear(x_real, x_imag, w_real, w_imag, b_real, b_imag))
    ref = _reference(x_real, x_imag, w_real, w_imag, b_real, b_imag,
                     quantize=True)
    assert out.shape == (batch, seq, out_f)
    assert out.dtype == jnp.complex64
    assert jnp.allclose(out, ref, atol=1e-2, rtol=1e-2)

    # --- Test 2: larger M -> Gauss 3-matmul, weight-resident path. --------
    batch2, seq2, in_f2, out_f2 = 8, 128, 64, 48
    scale2 = 1.0 / (in_f2 ** 0.5)
    x_real2 = jax.random.normal(ks[6], (batch2, seq2, in_f2), jnp.float32)
    x_imag2 = jax.random.normal(ks[7], (batch2, seq2, in_f2), jnp.float32)
    w_real2 = jax.random.uniform(ks[8], (out_f2, in_f2), jnp.float32, -scale2, scale2)
    w_imag2 = jax.random.uniform(ks[9], (out_f2, in_f2), jnp.float32, -scale2, scale2)
    b_real2 = jax.random.uniform(ks[10], (out_f2,), jnp.float32, -scale2, scale2)
    b_imag2 = jax.random.uniform(ks[11], (out_f2,), jnp.float32, -scale2, scale2)

    out2 = jax.block_until_ready(
        complex_linear(x_real2, x_imag2, w_real2, w_imag2, b_real2, b_imag2))
    ref2 = _reference(x_real2, x_imag2, w_real2, w_imag2, b_real2, b_imag2,
                      quantize=False)
    assert out2.shape == (batch2, seq2, out_f2)
    assert out2.dtype == jnp.complex64
    assert jnp.allclose(out2, ref2, atol=5e-2, rtol=5e-2)

    print("KERNEL_OK")
</pallas_src>

<mosaic_0001>
module attributes {stable_mosaic.version = 11 : i64} {
  func.func @_cl4_kernel(%arg0: i32, %arg1: i32, %arg2: i32, %arg3: memref<8x128xbf16, #tpu.memory_space<vmem>>, %arg4: memref<8x128xbf16, #tpu.memory_space<vmem>>, %arg5: memref<128x128xbf16, #tpu.memory_space<vmem>>, %arg6: memref<128x128xbf16, #tpu.memory_space<vmem>>, %arg7: memref<1x128xf32, #tpu.memory_space<vmem>>, %arg8: memref<1x128xf32, #tpu.memory_space<vmem>>, %arg9: memref<8x128xf32, #tpu.memory_space<vmem>>, %arg10: memref<8x128xf32, #tpu.memory_space<vmem>>) attributes {dimension_semantics = [#tpu.dimension_semantics<parallel>, #tpu.dimension_semantics<parallel>, #tpu.dimension_semantics<arbitrary>], iteration_bounds = array<i64: 2, 1, 1>, scalar_prefetch = 0 : i64, scratch_operands = 0 : i64, tpu.core_type = #tpu.core_type<tc>, window_params = [{transform_indices = @transform_0, window_bounds = array<i64: 8, 128>}, {transform_indices = @transform_1, window_bounds = array<i64: 8, 128>}, {transform_indices = @transform_2, window_bounds = array<i64: 128, 128>}, {transform_indices = @transform_3, window_bounds = array<i64: 128, 128>}, {transform_indices = @transform_4, window_bounds = array<i64: 1, 128>}, {transform_indices = @transform_5, window_bounds = array<i64: 1, 128>}, {transform_indices = @transform_6, window_bounds = array<i64: 8, 128>}, {transform_indices = @transform_7, window_bounds = array<i64: 8, 128>}]} {
    %c0_i32 = arith.constant 0 : i32
    %0 = arith.cmpi eq, %arg2, %c0_i32 : i32
    %1 = arith.extui %0 : i1 to i32
    %c0_i32_0 = arith.constant 0 : i32
    %2 = arith.cmpi ne, %1, %c0_i32_0 : i32
    scf.if %2 {
      %c0_19 = arith.constant 0 : index
      %c0_20 = arith.constant 0 : index
      %19 = vector.load %arg7[%c0_19, %c0_20] : memref<1x128xf32, #tpu.memory_space<vmem>>, vector<1x128xf32>
      %20 = vector.shape_cast %19 : vector<1x128xf32> to vector<1x128xf32>
      %21 = vector.broadcast %20 : vector<1x128xf32> to vector<8x128xf32>
      %c0_21 = arith.constant 0 : index
      %c0_22 = arith.constant 0 : index
      %22 = vector.load %arg9[%c0_21, %c0_22] : memref<8x128xf32, #tpu.memory_space<vmem>>, vector<8x128xf32>
      tpu.vector_store %arg9[%c0_21, %c0_22], %21 {strides = array<i32>} : memref<8x128xf32, #tpu.memory_space<vmem>>, vector<8x128xf32>,
      %c0_23 = arith.constant 0 : index
      %c0_24 = arith.constant 0 : index
      %23 = vector.load %arg8[%c0_23, %c0_24] : memref<1x128xf32, #tpu.memory_space<vmem>>, vector<1x128xf32>
      %24 = vector.shape_cast %23 : vector<1x128xf32> to vector<1x128xf32>
      %25 = vector.broadcast %24 : vector<1x128xf32> to vector<8x128xf32>
      %c0_25 = arith.constant 0 : index
      %c0_26 = arith.constant 0 : index
      %26 = vector.load %arg10[%c0_25, %c0_26] : memref<8x128xf32, #tpu.memory_space<vmem>>, vector<8x128xf32>
      tpu.vector_store %arg10[%c0_25, %c0_26], %25 {strides = array<i32>} : memref<8x128xf32, #tpu.memory_space<vmem>>, vector<8x128xf32>,
    } else {
    }
    %c0 = arith.constant 0 : index
    %c0_1 = arith.constant 0 : index
    %3 = vector.load %arg3[%c0, %c0_1] : memref<8x128xbf16, #tpu.memory_space<vmem>>, vector<8x128xbf16>
    %c0_2 = arith.constant 0 : index
    %c0_3 = arith.constant 0 : index
    %4 = vector.load %arg4[%c0_2, %c0_3] : memref<8x128xbf16, #tpu.memory_space<vmem>>, vector<8x128xbf16>
    %c0_4 = arith.constant 0 : index
    %c0_5 = arith.constant 0 : index
    %5 = vector.load %arg5[%c0_4, %c0_5] : memref<128x128xbf16, #tpu.memory_space<vmem>>, vector<128x128xbf16>
    %c0_6 = arith.constant 0 : index
    %c0_7 = arith.constant 0 : index
    %6 = vector.load %arg6[%c0_6, %c0_7] : memref<128x128xbf16, #tpu.memory_space<vmem>>, vector<128x128xbf16>
    %cst = arith.constant dense<0.000000e+00> : vector<8x128xf32>
    %7 = tpu.matmul %3, %5, %cst {dimension_numbers = #tpu.dot_dimension_numbers<[1], [0], [0], [1], [0, 0, 1, 1], [], []>} : vector<8x128xbf16>, vector<128x128xbf16>, vector<8x128xf32> -> vector<8x128xf32>
    %cst_8 = arith.constant dense<0.000000e+00> : vector<8x128xf32>
    %8 = tpu.matmul %4, %6, %cst_8 {dimension_numbers = #tpu.dot_dimension_numbers<[1], [0], [0], [1], [0, 0, 1, 1], [], []>} : vector<8x128xbf16>, vector<128x128xbf16>, vector<8x128xf32> -> vector<8x128xf32>
    %cst_9 = arith.constant dense<0.000000e+00> : vector<8x128xf32>
    %9 = tpu.matmul %3, %6, %cst_9 {dimension_numbers = #tpu.dot_dimension_numbers<[1], [0], [0], [1], [0, 0, 1, 1], [], []>} : vector<8x128xbf16>, vector<128x128xbf16>, vector<8x128xf32> -> vector<8x128xf32>
    %cst_10 = arith.constant dense<0.000000e+00> : vector<8x128xf32>
    %10 = tpu.matmul %4, %5, %cst_10 {dimension_numbers = #tpu.dot_dimension_numbers<[1], [0], [0], [1], [0, 0, 1, 1], [], []>} : vector<8x128xbf16>, vector<128x128xbf16>, vector<8x128xf32> -> vector<8x128xf32>
    %c0_11 = arith.constant 0 : index
    %c0_12 = arith.constant 0 : index
    %11 = vector.load %arg9[%c0_11, %c0_12] : memref<8x128xf32, #tpu.memory_space<vmem>>, vector<8x128xf32>
    %12 = arith.subf %7, %8 : vector<8x128xf32>
    %13 = arith.addf %11, %12 : vector<8x128xf32>
    %c0_13 = arith.constant 0 : index
    %c0_14 = arith.constant 0 : index
    %14 = vector.load %arg9[%c0_13, %c0_14] : memref<8x128xf32, #tpu.memory_space<vmem>>, vector<8x128xf32>
    tpu.vector_store %arg9[%c0_13, %c0_14], %13 {strides = array<i32>} : memref<8x128xf32, #tpu.memory_space<vmem>>, vector<8x128xf32>,
    %c0_15 = arith.constant 0 : index
    %c0_16 = arith.constant 0 : index
    %15 = vector.load %arg10[%c0_15, %c0_16] : memref<8x128xf32, #tpu.memory_space<vmem>>, vector<8x128xf32>
    %16 = arith.addf %9, %10 : vector<8x128xf32>
    %17 = arith.addf %15, %16 : vector<8x128xf32>
    %c0_17 = arith.constant 0 : index
    %c0_18 = arith.constant 0 : index
    %18 = vector.load %arg10[%c0_17, %c0_18] : memref<8x128xf32, #tpu.memory_space<vmem>>, vector<8x128xf32>
    tpu.vector_store %arg10[%c0_17, %c0_18], %17 {strides = array<i32>} : memref<8x128xf32, #tpu.memory_space<vmem>>, vector<8x128xf32>,
    return
  }
  func.func @transform_0(%arg0: i32, %arg1: i32, %arg2: i32) -> (i32, i32) {
    %c0_i32 = arith.constant 0 : i32
    return %arg0, %arg2 : i32, i32
  }
  func.func @transform_1(%arg0: i32, %arg1: i32, %arg2: i32) -> (i32, i32) {
    %c0_i32 = arith.constant 0 : i32
    return %arg0, %arg2 : i32, i32
  }
  func.func @transform_2(%arg0: i32, %arg1: i32, %arg2: i32) -> (i32, i32) {
    %c0_i32 = arith.constant 0 : i32
    return %arg2, %arg1 : i32, i32
  }
  func.func @transform_3(%arg0: i32, %arg1: i32, %arg2: i32) -> (i32, i32) {
    %c0_i32 = arith.constant 0 : i32
    return %arg2, %arg1 : i32, i32
  }
  func.func @transform_4(%arg0: i32, %arg1: i32, %arg2: i32) -> (i32, i32) {
    %c0_i32 = arith.constant 0 : i32
    %c0_i32_0 = arith.constant 0 : i32
    return %c0_i32, %arg1 : i32, i32
  }
  func.func @transform_5(%arg0: i32, %arg1: i32, %arg2: i32) -> (i32, i32) {
    %c0_i32 = arith.constant 0 : i32
    %c0_i32_0 = arith.constant 0 : i32
    return %c0_i32, %arg1 : i32, i32
  }
  func.func @transform_6(%arg0: i32, %arg1: i32, %arg2: i32) -> (i32, i32) {
    %c0_i32 = arith.constant 0 : i32
    return %arg0, %arg1 : i32, i32
  }
  func.func @transform_7(%arg0: i32, %arg1: i32, %arg2: i32) -> (i32, i32) {
    %c0_i32 = arith.constant 0 : i32
    return %arg0, %arg1 : i32, i32
  }
}

</mosaic_0001>

<bundles_post_ra>
// kernel: tpu_custom_call.1
= control target key start
LH: loop header
LB: loop body
LE: loop exit
PB: predicated region body
PF: predicated region fallthrough
CT: control target
= control target key end

     0   :  { %s1844_s0 = inlined_call_operand.hbm [shape: bf16[16,128], index: 0, kind: input, shape index: {}]   ;;  %s1845_s1 = inlined_call_operand.hbm [shape: bf16[16,128], index: 1, kind: input, shape index: {}]   ;;  %s1846_s2 = inlined_call_operand.hbm [shape: bf16[128,128], index: 2, kind: input, shape index: {}]   ;;  %s1847_s3 = inlined_call_operand.hbm [shape: bf16[128,128], index: 3, kind: input, shape index: {}]   ;;  %s1848_s4 = inlined_call_operand.vmem [shape: f32[1,128], index: 4, kind: input, shape index: {}]   ;;  %s1849_s5 = inlined_call_operand.vmem [shape: f32[1,128], index: 5, kind: input, shape index: {}]   ;;  %s1850_s6 = inlined_call_operand.hbm [shape: f32[16,128], index: 6, kind: output, shape index: {0}]   ;;  %s1851_s7 = inlined_call_operand.hbm [shape: f32[16,128], index: 7, kind: output, shape index: {1}]  }
   0x1   :  { %1854 = sst [smem:[#allocation20_spill]] %s1844_s0 }
   0x2   :  { %1855 = sst [smem:[#allocation21_spill]] %s1845_s1 }
   0x3   :  { %1856 = sst [smem:[#allocation22_spill]] %s1846_s2 }
   0x4   :  { %1857 = sst [smem:[#allocation23_spill]] %s1847_s3 }
   0x5   :  { %13 = vsyncpa [#allocation3], 0 }
   0x6   :  { %15 = vsyncpa [#allocation3 + $0x1], 0 }
   0x7   :  { %16 = vsyncpa [#allocation6], 0 }
   0x8   :  { %18 = vsyncpa [#allocation6 + $0x1], 0 }
   0x9   :  { %19 = vsyncpa [#allocation9], 0 }
   0xa   :  { %20 = vsyncpa [#allocation4], 0 }
   0xb   :  { %22 = vsyncpa [#allocation4 + $0x1], 0 }
   0xc   :  { %23 = vsyncpa [#allocation12], 0 }
   0xd   :  { %25 = vsyncpa [#allocation12 + $0x1], 0  ;;  %s1549_s24 = smov 0   ;;  %s1551_s25 = smov 0  }
   0xe   :  { %s1553_s26 = smov 0   ;;  %s1555_s27 = smov 0  }
   0xf   :  { %s1557_s28 = smov 0   ;;  %s1559_s29 = smov 0  }
  0x10 LB: > { %s1580_s30 = sadd.s32 4294967295, %s1497_s29   ;;  %s996_s8 = sadd.s32 4294967294, %s1497_s29   ;;  %s1497_s29 = sphi %s1559_s29, %s31_s29   ;;  %s1493_s28 = sphi %s1557_s28, %s1881_s28   ;;  %s1489_s27 = sphi %s1555_s27, %s1880_s27   ;;  %s1485_s26 = sphi %s1553_s26, %s1879_s26   ;;  %s1481_s25 = sphi %s1551_s25, %s1878_s25   ;;  %s1477_s24 = sphi %s1549_s24, %s1877_s24  }
  0x11   : > { %p72_p0 = scmp.ne.s32.totalorder %s1481_s25, %s1477_s24  ;;  %p1852_p1 = scmp.eq.s32.totalorder %s1580_s30, 0 }
  0x12   : > { %p240_p3 = scmp.eq.s32.totalorder %s996_s8, 1  ;;  %p997_p5 = scmp.ge.s32.totalorder %s1497_s29, 1 }
  0x13   : > { %p1589_p4 = por %p1852_p1, %p72_p0  ;;  %p275_p7 = scmp.lt.s32.totalorder %s1497_s29, 3 }
  0x14   : > { %p1594_p6 = por %p240_p3, %p72_p0  ;;  %s1499_s12 = smov [#allocation7]  }
  0x15   : > { %p1599_p8 = pnand %p997_p5, %p275_p7  ;;  %s291_s13 = sshll.u32 %s1499_s12, 4  ;;  %s292_s13 = int_to_ptr.vmem [resolvable:$true] %s291_s13 }
  0x16   : > { %s1859_s10 = scalar_select %p1594_p6, 1, 0 }
  0x17   : > { %p1170_p9 = pneg %p1599_p8  ;;  %s1500_s15 = smov [#allocation8]  }
  0x18   : > { %s308_s16 = sshll.u32 %s1500_s15, 4  ;;  %s1278_s17 = scalar_lea.vmem %s292_s13, 1024  ;;  %s309_s16 = int_to_ptr.vmem [resolvable:$true] %s308_s16 }
  0x19   : > { %p1608_p11 = pnand %p1170_p9, %p1852_p1  ;;  %p1279_p13 = scmp.ne.s32.totalorder %s292_s13, %s1278_s17 }
  0x1a   : > { %p1286_p5 = scmp.lt.s32.totalorder %s292_s13, %s292_s13  ;;  %p1287_p7 = scmp.lt.s32.totalorder %s1278_s17, %s1278_s17 }
  0x1b   : > { %p1269_p12 = pneg %p1608_p11 }
  0x1c   : > { %p1288_p10 = por %p1287_p7, %p1286_p5 }
  0x1d   : > { %p1281_p0 = pnand %p1279_p13, %p1269_p12 }
  0x1f   : > { %p1282_p3 = pneg %p1281_p0 }
  0x21   : > { %p1289_p9 = pnand %p1288_p10, %p1282_p3 }
  0x23   : > { %1292 = shalt.err (!%p1289_p9)
}
  0x24   : > { %s1501_s18 = smov 64   ;;  %s1502_s19 = smov 4  }
  0x25   : > { %s1862_s2 = sld [smem:[#allocation22_spill]]  ;;  %s1304_s22 = scalar_lea.vmem %s309_s16, 1024 }
  0x26   : > { %p1305_p1 = scmp.ne.s32.totalorder %s309_s16, %s1304_s22  ;;  %p1312_p2 = scmp.lt.s32.totalorder %s309_s16, %s309_s16 }
  0x27   : > { %p1313_p6 = scmp.lt.s32.totalorder %s1304_s22, %s1304_s22 }
  0x28   : > { %p1307_p13 = pnand %p1305_p1, %p1269_p12 }
  0x29   : > { %p1314_p5 = por %p1313_p6, %p1312_p2 }
  0x2a   : > { %p1308_p0 = pneg %p1307_p13 }
  0x2b   : > { %1173 = dma.hbm_to_vmem [thread:$0]  (!%p1608_p11), %s1862_s2, 1024, %s292_s13, [#allocation6], %s1501_s18, %s1501_s18, %s1502_s19  }
  0x2c   : > { %p1315_p10 = pnand %p1314_p5, %p1308_p0 }
  0x2e   : > { %1318 = shalt.err (!%p1315_p10)
}
  0x2f   : > { %s1863_s3 = sld [smem:[#allocation23_spill]]  ;;  %s50_s12 = sadd.s32 1, %s1493_s28 }
  0x30   : > { %s59_s13 = sadd.s32 1, %s1485_s26  ;;  %p52_p1 = scmp.ge.s32.totalorder %s50_s12, 2 }
  0x31   : > { %p66_p2 = scmp.ne.s32.totalorder %s1485_s26, %s1481_s25  ;;  %p67_p6 = scmp.eq.s32.totalorder %s1497_s29, 0 }
  0x32   : > { %p1193_p12 = scmp.lt.s32.totalorder %s1497_s29, 2  ;;  %s1883_s12 = smov (%p52_p1, %s50_s12), 0 }
  0x33   : > { %1864 = sst [smem:[#allocation19_spill]] %s1883_s12  ;;  %p68_p3 = por %p67_p6, %p66_p2 }
  0x34   : > { %p1865_p7 = scmp.eq.s32.totalorder %s1580_s30, 1  ;;  %s54_s15 = ssub.s32 %s1493_s28, %s1883_s12 }
  0x35   : > { %1176 = dma.hbm_to_vmem [thread:$0]  (!%p1608_p11), %s1863_s3, 1024, %s309_s16, [#allocation9], %s1501_s18, %s1501_s18, %s1502_s19  }
  0x36   : > { %p1640_p9 = por %p1865_p7, %p66_p2  ;;  %s334_s17 = sand.u32 1, %s1485_s26  }
  0x37   : > { %p57_p13 = scmp.eq.s32.totalorder %s54_s15, 0  ;;  %s1003_s16 = sshll.u32 %s334_s17, 2 }
  0x38   : > { %s1004_s18 = sshll.u32 %s1493_s28, 6  ;;  %s1867_s0 = sld [smem:[#allocation20_spill]] }
  0x39   : > { %s1649_s19 = scalar_select %p57_p13, %s1485_s26, %s59_s13  }
  0x3a   : > { %s338_s23 = scalar_lea.vmem [#allocation2], %s1003_s16  ;;  %p1656_p11 = pnand %p1193_p12, %p68_p3 }
  0x3b   : > { %s346_s8 = sshll.u32 %s338_s23, 4  ;;  %s1869_s1 = sld [smem:[#allocation21_spill]]  ;;  %s347_s8 = int_to_ptr.vmem [resolvable:$true] %s346_s8 }
  0x3c   : > { %s335_s13 = scalar_lea.sflag [#allocation3], %s334_s17  ;;  %p1321_p0 = pneg %p1656_p11 }
  0x3d   : > { %s1332_s20 = scalar_lea.vmem %s347_s8, 64  ;;  %s1503_s21 = smov [#allocation2]  }
  0x3e   : > { %s344_s22 = scalar_lea.hbm %s1867_s0, %s1004_s18  ;;  %p1333_p5 = scmp.ne.s32.totalorder %s347_s8, %s1332_s20 }
  0x3f   : > { %s1337_s23 = sshll.u32 %s1503_s21, 4  ;;  %s1338_s23 = int_to_ptr.vmem [resolvable:$false] %s1337_s23 }
  0x40   : > { %p1335_p10 = pnand %p1333_p5, %p1321_p0  ;;  %s1339_s0 = scalar_lea.vmem %s1338_s23, 128 }
  0x41   : > { %s1663_s12 = scalar_lea.hbm %s1869_s1, %s1004_s18  ;;  %p1340_p2 = scmp.lt.s32.totalorder %s347_s8, %s1338_s23 }
  0x42   : > { %p1336_p1 = pneg %p1335_p10  ;;  %p1341_p6 = scmp.lt.s32.totalorder %s1339_s0, %s1332_s20 }
  0x44   : > { %p1342_p12 = por %p1341_p6, %p1340_p2 }
  0x46   : > { %p1343_p3 = pnand %p1342_p12, %p1336_p1 }
  0x48   : > { %1346 = shalt.err (!%p1343_p3)
}
  0x49   : > { %1180 = dma.hbm_to_vmem [thread:$0]  (!%p1656_p11), %s344_s22, 64, %s347_s8, %s335_s13  }
  0x4a   : > { %s353_s3 = sand.u32 1, %s1497_s29   ;;  %s357_s17 = scalar_lea.vmem [#allocation5], %s1003_s16 }
  0x4b   : > { %s365_s18 = sshll.u32 %s357_s17, 4  ;;  %s354_s15 = scalar_lea.sflag [#allocation6], %s353_s3  ;;  %s366_s18 = int_to_ptr.vmem [resolvable:$true] %s365_s18 }
  0x4c   : > { %s1360_s1 = scalar_lea.vmem %s366_s18, 64  ;;  %s1504_s0 = smov [#allocation5]  }
  0x4d   : > { %p1361_p7 = scmp.ne.s32.totalorder %s366_s18, %s1360_s1  ;;  %s1365_s20 = sshll.u32 %s1504_s0, 4  ;;  %s1366_s20 = int_to_ptr.vmem [resolvable:$false] %s1365_s20 }
  0x4e   : > { %s1367_s21 = scalar_lea.vmem %s1366_s20, 128  ;;  %p1368_p10 = scmp.lt.s32.totalorder %s366_s18, %s1366_s20 }
  0x4f   : > { %p1363_p13 = pnand %p1361_p7, %p1321_p0  ;;  %p1369_p1 = scmp.lt.s32.totalorder %s1367_s21, %s1360_s1 }
  0x51   : > { %p1364_p5 = pneg %p1363_p13  ;;  %p1370_p2 = por %p1369_p1, %p1368_p10 }
  0x53   : > { %p1371_p6 = pnand %p1370_p2, %p1364_p5 }
  0x55   : > { %1374 = shalt.err (!%p1371_p6)
}
  0x56   : > { %1183 = dma.hbm_to_vmem [thread:$0]  (!%p1656_p11), %s1663_s12, 64, %s366_s18, %s354_s15  }
  0x57   : > { %374 = sbr.rel (%p1599_p8) target bundleno = 379 (0x17b), region = 44  ;;  %s1682_s16 = sand.u32 (!%p1599_p8), 1, %s1481_s25  }
  0x58   : > { %s1008_s22 = sshll.u32 (!%p1599_p8), %s1682_s16, 2  ;;  %s377_s8 = scalar_lea.sflag (!%p1599_p8), [#allocation3], %s1682_s16 }
  0x59   : > { %s1686_s13 = scalar_lea.vmem (!%p1599_p8), [#allocation2], %s1008_s22 }
  0x5c   : > { %1452 = dma.done.wait (%p1589_p4), %s377_s8, 64  }
  0x5d   : > { %1454 = vsyncadd (%p1589_p4), %s377_s8, 4294967232  ;;  %s385_s1 = sand.u32 1, %s1580_s30   ;;  %s1693_s11 = scalar_lea.vmem [#allocation5], %s1008_s22 }
  0x5e   : > { %s386_s2 = scalar_lea.sflag [#allocation6], %s385_s1 }
  0x5f   : > { %1456 = dma.done.wait (%p1589_p4), %s386_s2, 64  }
  0x60   : > { %1458 = vsyncadd (%p1589_p4), %s386_s2, 4294967232  ;;  %p1870_p8 = scmp.eq.s32.totalorder %s1580_s30, 0 }
  0x62   : > { %1460 = dma.done.wait (%p1870_p8), [#allocation6], 1024   ;;  %p1871_p11 = pmov %p1870_p8 }
  0x63   : > { %p1872_p0 = pmov %p1870_p8 }
  0x64   : > { %1462 = vsyncadd (%p1871_p11), [#allocation6], 4294966272 }
  0x65   : > { %1464 = dma.done.wait (%p1872_p0), [#allocation9], 1024   ;;  %p1873_p12 = pmov %p1872_p0 }
  0x66   : > { %v1505_v0 = vmov 0.0   ;;  %vm1506_vm0 = vmmov 0   ;;  %v1251_v1 = vld [vmem:[#allocation7 + $0x38] sm:$0xff]   ;;  %v1253_v3 = vld [vmem:[#allocation7 + $0x30] sm:$0xff]   ;;  %v1255_v5 = vld [vmem:[#allocation7 + $0x28] sm:$0xff]   ;;  %s1012_s30 = sshll.u32 %s1682_s16, 3 }
  0x67   : > { %1466 = vsyncadd (%p1873_p12), [#allocation9], 4294966272  ;;  %1074 = vmatprep.subr.bf16.mxu0 %v1505_v0  ;;  %1094 = vmatprep.subr.bf16.mxu1 %v1505_v0  ;;  %v1252_v2 = vld [vmem:[#allocation8 + $0x38] sm:$0xff]   ;;  %v1254_v4 = vld [vmem:[#allocation8 + $0x30] sm:$0xff]   ;;  %s1034_s23 = sshll.u32 %s1489_s27, 7  ;;  %s436_s3 = scalar_lea.vmem [#allocation10], %s1012_s30 }
  0x68   : > { %1090 = vmatprep.mubr.msk.bf16.mxu0 %vm1506_vm0, %v1505_v0  ;;  %1110 = vmatprep.mubr.msk.bf16.mxu1 %vm1506_vm0, %v1505_v0  ;;  %v1256_v6 = vld [vmem:[#allocation8 + $0x28] sm:$0xff]   ;;  %v1257_v7 = vld [vmem:[#allocation7 + $0x20] sm:$0xff]   ;;  %v1259_v9 = vld [vmem:[#allocation7 + $0x18] sm:$0xff]   ;;  %s790_s17 = sshll.u32 %s436_s3, 4  ;;  %s1761_s0 = scalar_lea.hbm %s1850_s6, %s1034_s23  ;;  %s1763_s17 = int_to_ptr.vmem [resolvable:$true] %s790_s17 }
  0x69   : > { %1075 = vmatpush3.bf16.msra.mxu0 %v1251_v1  ;;  %1095 = vmatpush3.bf16.msra.mxu1 %v1252_v2  ;;  %v1258_v8 = vld [vmem:[#allocation8 + $0x20] sm:$0xff]   ;;  %v1260_v10 = vld [vmem:[#allocation8 + $0x18] sm:$0xff]   ;;  %v1261_v11 = vld [vmem:[#allocation7 + $0x10] sm:$0xff]   ;;  %s771_s20 = scalar_lea.sflag [#allocation4], %s1682_s16  ;;  %s1375_s21 = scalar_lea.vmem %s1763_s17, 128 }
  0x6a   : > { %1076 = vmatprep.subr.bf16.mxu0 %v1505_v0  ;;  %1096 = vmatprep.subr.bf16.mxu1 %v1505_v0  ;;  %v1262_v12 = vld [vmem:[#allocation8 + $0x10] sm:$0xff]   ;;  %v1263_v13 = vld [vmem:[#allocation7 + $0x8] sm:$0xff]   ;;  %v1265_v15 = vld [vmem:[#allocation7] sm:$0xff]   ;;  %p1376_p4 = scmp.ne.s32.totalorder %s1763_s17, %s1375_s21  ;;  %s1507_s22 = smov [#allocation10]  }
  0x6b   : > { %v1264_v14 = vld [vmem:[#allocation8 + $0x8] sm:$0xff]   ;;  %v1266_v16 = vld [vmem:[#allocation8] sm:$0xff]   ;;  %v473_v17 = vld [vmem:[%s1686_s13] sm:$0xf]  ;;  %s1379_s8 = sshll.u32 %s1507_s22, 4  ;;  %s1380_s8 = int_to_ptr.vmem [resolvable:$false] %s1379_s8 }
  0x6c   : > { %v474_v18 = vld [vmem:[%s1693_s11] sm:$0xf]  ;;  %v1014_v20 = vld [vmem:[%s1848_s4] ss:$0 sm:$0xff]  ;;  %p1377_p3 = pnand %p1376_p4, %p1640_p9  ;;  %s1381_s13 = scalar_lea.vmem %s1380_s8, 256 }
  0x6d   : > { %1077 = vmatpush3.bf16.msra.mxu0 %v1253_v3  ;;  %1097 = vmatpush3.bf16.msra.mxu1 %v1254_v4  ;;  %p1382_p13 = scmp.lt.s32.totalorder %s1763_s17, %s1380_s8  ;;  %p1383_p5 = scmp.lt.s32.totalorder %s1381_s13, %s1375_s21 }
  0x6e   : > { %1078 = vmatprep.subr.bf16.mxu0 %v1505_v0  ;;  %1098 = vmatprep.subr.bf16.mxu1 %v1505_v0  ;;  %p1378_p7 = pneg %p1377_p3 }
  0x6f   : > { %p1384_p10 = por %p1383_p5, %p1382_p13 }
  0x71   : > { %1079 = vmatpush3.bf16.msra.mxu0 %v1255_v5  ;;  %1099 = vmatpush3.bf16.msra.mxu1 %v1256_v6  ;;  %p1385_p1 = pnand %p1384_p10, %p1378_p7 }
  0x72   : > { %1080 = vmatprep.subr.bf16.mxu0 %v1505_v0  ;;  %1100 = vmatprep.subr.bf16.mxu1 %v1505_v0 }
  0x75   : > { %1081 = vmatpush3.bf16.msra.mxu0 %v1257_v7  ;;  %1101 = vmatpush3.bf16.msra.mxu1 %v1258_v8 }
  0x76   : > { %1082 = vmatprep.subr.bf16.mxu0 %v1505_v0  ;;  %1102 = vmatprep.subr.bf16.mxu1 %v1505_v0 }
  0x79   : > { %1083 = vmatpush3.bf16.msra.mxu0 %v1259_v9  ;;  %1103 = vmatpush3.bf16.msra.mxu1 %v1260_v10 }
  0x7a   : > { %1084 = vmatprep.subr.bf16.mxu0 %v1505_v0  ;;  %1104 = vmatprep.subr.bf16.mxu1 %v1505_v0 }
  0x7d   : > { %1085 = vmatpush3.bf16.msra.mxu0 %v1261_v11  ;;  %1105 = vmatpush3.bf16.msra.mxu1 %v1262_v12 }
  0x7e   : > { %1086 = vmatprep.subr.bf16.mxu0 %v1505_v0  ;;  %1106 = vmatprep.subr.bf16.mxu1 %v1505_v0 }
  0x81   : > { %1087 = vmatpush3.bf16.msra.mxu0 %v1263_v13  ;;  %1107 = vmatpush3.bf16.msra.mxu1 %v1264_v14 }
  0x82   : > { %1088 = vmatprep.subr.bf16.mxu0 %v1505_v0  ;;  %1108 = vmatprep.subr.bf16.mxu1 %v1505_v0 }
  0x85   : > { %1089 = vmatpush3.bf16.msra.mxu0 %v1265_v15  ;;  %1109 = vmatpush3.bf16.msra.mxu1 %v1266_v16 }
  0x86   : > { %1114 = vmatprep.subr.bf16.mxu0 %v1505_v0  ;;  %1134 = vmatprep.subr.bf16.mxu1 %v1505_v0 }
  0x88   : > { %1091 = vmatmul.mubr.bf16.vlgmr.msra.gmra.mxu0 %v473_v17  ;;  %1111 = vmatmul.mubr.bf16.vlgmr.msra.gmra.mxu1 %v474_v18 }
  0x89   : > { %1115 = vmatpush3.bf16.msra.mxu0 %v1251_v1  ;;  %1135 = vmatpush3.bf16.msra.mxu1 %v1252_v2 }
  0x8a   : > { %1116 = vmatprep.subr.bf16.mxu0 %v1505_v0  ;;  %1136 = vmatprep.subr.bf16.mxu1 %v1505_v0 }
  0x8b   : > { %1130 = vmatprep.mubr.msk.bf16.mxu0 %vm1506_vm0, %v1505_v0  ;;  %1150 = vmatprep.mubr.msk.bf16.mxu1 %vm1506_vm0, %v1505_v0 }
  0x8d   : > { %1117 = vmatpush3.bf16.msra.mxu0 %v1253_v3  ;;  %1137 = vmatpush3.bf16.msra.mxu1 %v1254_v4 }
  0x8e   : > { %1118 = vmatprep.subr.bf16.mxu0 %v1505_v0  ;;  %1138 = vmatprep.subr.bf16.mxu1 %v1505_v0 }
  0x91   : > { %1119 = vmatpush3.bf16.msra.mxu0 %v1255_v5  ;;  %1139 = vmatpush3.bf16.msra.mxu1 %v1256_v6 }
  0x92   : > { %1120 = vmatprep.subr.bf16.mxu0 %v1505_v0  ;;  %1140 = vmatprep.subr.bf16.mxu1 %v1505_v0 }
  0x95   : > { %1121 = vmatpush3.bf16.msra.mxu0 %v1257_v7  ;;  %1141 = vmatpush3.bf16.msra.mxu1 %v1258_v8 }
  0x96   : > { %1122 = vmatprep.subr.bf16.mxu0 %v1505_v0  ;;  %1142 = vmatprep.subr.bf16.mxu1 %v1505_v0 }
  0x99   : > { %1123 = vmatpush3.bf16.msra.mxu0 %v1259_v9  ;;  %1143 = vmatpush3.bf16.msra.mxu1 %v1260_v10 }
  0x9a   : > { %1124 = vmatprep.subr.bf16.mxu0 %v1505_v0  ;;  %1144 = vmatprep.subr.bf16.mxu1 %v1505_v0 }
  0x9d   : > { %1125 = vmatpush3.bf16.msra.mxu0 %v1261_v11  ;;  %1145 = vmatpush3.bf16.msra.mxu1 %v1262_v12 }
  0x9e   : > { %1126 = vmatprep.subr.bf16.mxu0 %v1505_v0  ;;  %1146 = vmatprep.subr.bf16.mxu1 %v1505_v0 }
  0xa1   : > { %1127 = vmatpush3.bf16.msra.mxu0 %v1263_v13  ;;  %1147 = vmatpush3.bf16.msra.mxu1 %v1264_v14 }
  0xa2   : > { %1128 = vmatprep.subr.bf16.mxu0 %v1505_v0  ;;  %1148 = vmatprep.subr.bf16.mxu1 %v1505_v0 }
  0xa5   : > { %1129 = vmatpush3.bf16.msra.mxu0 %v1265_v15  ;;  %1149 = vmatpush3.bf16.msra.mxu1 %v1266_v16 }
  0xa8   : > { %1131 = vmatmul.mubr.bf16.vlgmr.msra.gmra.mxu0 %v474_v18  ;;  %1151 = vmatmul.mubr.bf16.vlgmr.msra.gmra.mxu1 %v473_v17 }
 0x148   : > { %v589_v19 = vpop.f32.mrf.mxu0  ;;  %v677_v21 = vpop.f32.mrf.mxu1 }
 0x149   : > { %v724_v22 = vsub.f32 %v589_v19, %v677_v21 }
 0x14a   : > { %v1092_v23 = vpop.f32.mrf.mxu0  ;;  %v1112_v24 = vpop.f32.mrf.mxu1 }
 0x14b   : > { %v725_v25 = vadd.f32 %v1014_v20, %v724_v22 }
 0x14c   : > { %v592_v26 = vpop.f32.mrf.mxu0  ;;  %v680_v27 = vpop.f32.mrf.mxu1 }
 0x14d   : > { %726 = vst [vmem:[%s436_s3] sm:$0xff] %v725_v25 }
 0x14e   : > { %v1093_v28 = vpop.f32.mrf.mxu0  ;;  %v1113_v29 = vpop.f32.mrf.mxu1 }
 0x14f   : > { %1388 = shalt.err (!%p1385_p1)
}
 0x150   : > { %s1389_s1 = scalar_lea.hbm %s1761_s0, 128  ;;  %s1393_s9 = scalar_lea.hbm %s1850_s6, 256 }
 0x151   : > { %p1390_p2 = scmp.ne.s32.totalorder %s1761_s0, %s1389_s1  ;;  %p1394_p11 = scmp.lt.s32.totalorder %s1761_s0, %s1850_s6 }
 0x152   : > { %p1395_p0 = scmp.lt.s32.totalorder %s1393_s9, %s1389_s1 }
 0x153   : > { %p1391_p6 = pnand %p1390_p2, %p1640_p9 }
 0x154   : > { %p1396_p12 = por %p1395_p0, %p1394_p11 }
 0x155   : > { %p1392_p8 = pneg %p1391_p6 }
 0x157   : > { %p1397_p4 = pnand %p1396_p12, %p1392_p8 }
 0x159   : > { %1400 = shalt.err (!%p1397_p4)
}
 0x15a   : > { %1166 = dma.vmem_to_hbm [thread:$0]  (%p1640_p9), %s1763_s17, 128, %s1761_s0, %s771_s20   ;;  %v1015_v31 = vld [vmem:[%s1849_s5] ss:$0 sm:$0xff] }
 0x15b   : > { %s443_s21 = scalar_lea.vmem [#allocation11], %s1012_s30  ;;  %s1796_s17 = scalar_lea.hbm %s1851_s7, %s1034_s23 }
 0x15c   : > { %s804_s22 = sshll.u32 %s443_s21, 4  ;;  %s776_s30 = scalar_lea.sflag [#allocation12], %s1682_s16  ;;  %s1798_s22 = int_to_ptr.vmem [resolvable:$true] %s804_s22 }
 0x15d   : > { %s1401_s0 = scalar_lea.vmem %s1798_s22, 128  ;;  %s1508_s27 = smov [#allocation11]  }
 0x15e   : > { %p1402_p3 = scmp.ne.s32.totalorder %s1798_s22, %s1401_s0  ;;  %s1405_s20 = sshll.u32 %s1508_s27, 4  ;;  %s1406_s20 = int_to_ptr.vmem [resolvable:$false] %s1405_s20 }
 0x15f   : > { %s1407_s23 = scalar_lea.vmem %s1406_s20, 256  ;;  %p1408_p5 = scmp.lt.s32.totalorder %s1798_s22, %s1406_s20 }
 0x160   : > { %p1403_p7 = pnand %p1402_p3, %p1640_p9  ;;  %p1409_p10 = scmp.lt.s32.totalorder %s1407_s23, %s1401_s0 }
 0x162   : > { %p1404_p13 = pneg %p1403_p7  ;;  %p1410_p1 = por %p1409_p10, %p1408_p5 }
 0x164   : > { %p1411_p2 = pnand %p1410_p1, %p1404_p13 }
 0x168   : > { %v717_v30 = vpop.f32.mrf.mxu0  ;;  %v762_v32 = vpop.f32.mrf.mxu1 }
 0x169   : > { %v763_v33 = vadd.f32 %v762_v32, %v717_v30 }
 0x16a   : > { %v1132_v34 = vpop.f32.mrf.mxu0  ;;  %v1152_v35 = vpop.f32.mrf.mxu1 }
 0x16b   : > { %v768_v36 = vadd.f32 %v1015_v31, %v763_v33 }
 0x16c   : > { %v720_v37 = vpop.f32.mrf.mxu0  ;;  %v765_v38 = vpop.f32.mrf.mxu1 }
 0x16d   : > { %769 = vst [vmem:[%s443_s21] sm:$0xff] %v768_v36 }
 0x16e   : > { %v1133_v39 = vpop.f32.mrf.mxu0  ;;  %v1153_v40 = vpop.f32.mrf.mxu1 }
 0x16f   : > { %1414 = shalt.err (!%p1411_p2)
}
 0x170   : > { %s1415_s1 = scalar_lea.hbm %s1796_s17, 128  ;;  %s1419_s11 = scalar_lea.hbm %s1851_s7, 256 }
 0x171   : > { %p1416_p6 = scmp.ne.s32.totalorder %s1796_s17, %s1415_s1  ;;  %p1420_p0 = scmp.lt.s32.totalorder %s1796_s17, %s1851_s7 }
 0x172   : > { %p1421_p12 = scmp.lt.s32.totalorder %s1419_s11, %s1415_s1 }
 0x173   : > { %p1417_p8 = pnand %p1416_p6, %p1640_p9 }
 0x174   : > { %p1422_p4 = por %p1421_p12, %p1420_p0 }
 0x175   : > { %p1418_p11 = pneg %p1417_p8 }
 0x177   : > { %p1423_p3 = pnand %p1422_p4, %p1418_p11 }
 0x179   : > { %1426 = shalt.err (!%p1423_p3)
}
 0x17a   : > { %1167 = dma.vmem_to_hbm [thread:$0]  (%p1640_p9), %s1798_s22, 128, %s1796_s17, %s776_s30  }
 0x17b PF: > { %s816_s3 = sand.u32 1, %s1477_s24   ;;  %p1874_p7 = scmp.ne.s32.totalorder %s1859_s10, 0 }
 0x17c   : > { %p1875_p13 = scmp.ge.s32.totalorder %s1497_s29, 2  ;;  %s817_s18 = scalar_lea.sflag [#allocation4], %s816_s3 }
 0x17e   : > { %p1185_p5 = pnand %p1875_p13, %p1874_p7 }
 0x180   : > { %p1186_p10 = pneg %p1185_p5 }
 0x182   : > { %1468 = dma.done.wait (%p1186_p10), %s817_s18, 128  }
 0x183   : > { %1470 = vsyncadd (%p1186_p10), %s817_s18, 4294967168  ;;  %s826_s15 = scalar_lea.sflag [#allocation12], %s816_s3 }
 0x184   : > { %1472 = dma.done.wait (%p1186_p10), %s826_s15, 128  }
 0x185   : > { %1474 = vsyncadd (%p1186_p10), %s826_s15, 4294967168  ;;  %s31_s29 = sadd.s32 1, %s1497_s29   ;;  %s1876_s14 = sld [smem:[#allocation19_spill]] }
 0x186   : > { %p28_p1 = scmp.ge.s32.totalorder %s31_s29, 4   ;;  %s1877_s24 = smov %s1481_s25 }
 0x187   : > { %s1878_s25 = smov %s1485_s26  ;;  %s1879_s26 = smov %s1649_s19 }
 0x188   : > { %s1880_s27 = smov %s1493_s28  ;;  %30 = sbr.rel (!%p28_p1) target bundleno = 16 (0x10), region = 139 }
 0x18b   : > { %s1881_s28 = smov %s1876_s14 }
 0x18d   :  { %831 = vsyncpa [#allocation3], 1 }
 0x18e   :  { %833 = vsyncpa [#allocation3 + $0x1], 1 }
 0x18f   :  { %834 = vsyncpa [#allocation6], 1 }
 0x190   :  { %836 = vsyncpa [#allocation6 + $0x1], 1 }
 0x191   :  { %837 = vsyncpa [#allocation9], 1 }
 0x192   :  { %838 = vsyncpa [#allocation4], 1 }
 0x193   :  { %840 = vsyncpa [#allocation4 + $0x1], 1 }
 0x194   :  { %841 = vsyncpa [#allocation12], 1 }
 0x195   :  { %843 = vsyncpa [#allocation12 + $0x1], 1 }

</bundles_post_ra>
